<compile_context>
chip_gen: v7x
topology: tpu7x:2x2x1
jax: 0.10.0
libtpu: 0.0.40
codegen_flags: <defaults>
</compile_context>

<pallas_src>
import functools

import jax
import jax.numpy as jnp
from jax.experimental import pallas as pl
from jax.experimental.pallas import tpu as pltpu

LANE = 128
SUBLANE = 8
NEG_BIG = -1e9  # bias on padded action columns -> exp() underflows to 0


def _cdiv(a, b):
    return -(-a // b)


def _round_up(n, m):
    return _cdiv(n, m) * m


def _num_tensorcores():
    """Best-effort TensorCore count (2 on v7x, 1 on v5e/v6e). Safe fallback: 1."""
    try:
        info = pltpu.get_tpu_info()
        for attr in ("num_cores", "num_tensorcores", "tensorcore_count", "core_count"):
            v = getattr(info, attr, None)
            if isinstance(v, int) and v > 0:
                return v
    except Exception:
        pass
    return 1


def _policy_kernel(x_ref, w1_ref, b1_ref, w2_ref, b2_ref, out_ref):
    # fc1 + ReLU: bf16 MXU operands, f32 accumulation, f32 elementwise (v5e-safe).
    h = jnp.dot(x_ref[...], w1_ref[...], preferred_element_type=jnp.float32)  # (TB, Hp)
    h = jnp.maximum(h + b1_ref[...], 0.0)

    # fc2 on the lane-padded action tile; padded columns carry a -1e9 bias.
    logits = jnp.dot(h.astype(jnp.bfloat16), w2_ref[...],
                     preferred_element_type=jnp.float32)                      # (TB, Ap)
    logits = logits + b2_ref[...]

    # Numerically-stable softmax over the action axis; exact division.
    m = jnp.max(logits, axis=-1, keepdims=True)
    e = jnp.exp(logits - m)
    probs = e / jnp.sum(e, axis=-1, keepdims=True)

    # Store only the real action columns -> ~64x less output HBM traffic than
    # writing the full (TB, 128) padded slab.
    a = out_ref.shape[-1]
    out_ref[...] = probs[:, :a].astype(out_ref.dtype)


@functools.partial(jax.jit, static_argnames=("block_b",))
def policy_net_forward(x, w1, b1, w2, b2, *, block_b=4096):
    """x: (B, state_dim); w1: (state_dim, hidden); b1: (1, hidden);
    w2: (hidden, action_dim); b2: (1, action_dim). Returns (B, action_dim) f32."""
    B, S = x.shape
    H = w1.shape[1]
    A = w2.shape[1]

    Hp = _round_up(H, LANE)
    Ap = _round_up(A, LANE)

    # Weights -> bf16 (MXU fast path, half the resident VMEM); biases stay f32.
    w1p = jnp.pad(w1, ((0, 0), (0, Hp - H))).astype(jnp.bfloat16)        # (S, Hp)
    b1p = jnp.pad(b1.reshape(1, H), ((0, 0), (0, Hp - H)))               # (1, Hp) f32
    w2p = jnp.pad(w2, ((0, Hp - H), (0, Ap - A))).astype(jnp.bfloat16)   # (Hp, Ap)
    b2p = jnp.pad(b2.reshape(1, A), ((0, 0), (0, Ap - A)),
                  constant_values=NEG_BIG)                               # (1, Ap) f32

    # Balanced batch tiling: minimal padding; grid=1 when the batch fits one
    # tile; keep grid >= number of TensorCores (v7x megacore) when B is large
    # enough to split.
    n_tiles = max(_cdiv(B, block_b), 1)
    cores = _num_tensorcores()
    if cores > 1 and n_tiles < cores and B >= cores * SUBLANE:
        n_tiles = cores
    tb = _round_up(_cdiv(B, n_tiles), SUBLANE)
    Bp = n_tiles * tb

    # Activations pre-cast to bf16; zero-padded tail rows give a finite softmax
    # and are sliced off below.
    xp = jnp.pad(x, ((0, Bp - B), (0, 0))).astype(jnp.bfloat16)

    cost = pl.CostEstimate(
        flops=2 * Bp * (S * Hp + Hp * Ap),
        transcendentals=Bp * Ap,
        bytes_accessed=(xp.size * 2 + w1p.size * 2 + w2p.size * 2
                        + b1p.size * 4 + b2p.size * 4 + Bp * A * 4),
    )

    out = pl.pallas_call(
        _policy_kernel,
        out_shape=jax.ShapeDtypeStruct((Bp, A), jnp.float32),
        grid=(n_tiles,),
        in_specs=[
            pl.BlockSpec((tb, S), lambda i: (i, 0)),      # batch-tiled activations
            pl.BlockSpec((S, Hp), lambda i: (0, 0)),      # weights resident in VMEM
            pl.BlockSpec((1, Hp), lambda i: (0, 0)),
            pl.BlockSpec((Hp, Ap), lambda i: (0, 0)),
            pl.BlockSpec((1, Ap), lambda i: (0, 0)),
        ],
        out_specs=pl.BlockSpec((tb, A), lambda i: (i, 0)),   # only real action cols
        compiler_params=pltpu.CompilerParams(
            dimension_semantics=("parallel",)),
        cost_estimate=cost,
    )(xp, w1p, b1p, w2p, b2p)

    return out if Bp == B else out[:B]


def init_params(key, state_dim, hidden_dim, action_dim):
    """PyTorch Linear default init: U(-1/sqrt(fan_in), 1/sqrt(fan_in)); weights
    stored pre-transposed as (in, out)."""
    k1, k2, k3, k4 = jax.random.split(key, 4)
    lim1 = 1.0 / (state_dim ** 0.5)
    lim2 = 1.0 / (hidden_dim ** 0.5)
    w1 = jax.random.uniform(k1, (state_dim, hidden_dim), jnp.float32, -lim1, lim1)
    b1 = jax.random.uniform(k2, (1, hidden_dim), jnp.float32, -lim1, lim1)
    w2 = jax.random.uniform(k3, (hidden_dim, action_dim), jnp.float32, -lim2, lim2)
    b2 = jax.random.uniform(k4, (1, action_dim), jnp.float32, -lim2, lim2)
    return w1, b1, w2, b2


def _reference(x, w1, b1, w2, b2):
    h = jnp.maximum(x @ w1 + b1, 0.0)
    return jax.nn.softmax(h @ w2 + b2, axis=1)


if __name__ == "__main__":
    # Small shapes consistent with a REINFORCE policy (CartPole-like).
    batch, state_dim, hidden_dim, action_dim = 2, 4, 32, 2

    key = jax.random.PRNGKey(0)
    kx, kp, kx2 = jax.random.split(key, 3)
    x = jax.random.normal(kx, (batch, state_dim), jnp.float32)
    w1, b1, w2, b2 = init_params(kp, state_dim, hidden_dim, action_dim)

    out = jax.block_until_ready(policy_net_forward(x, w1, b1, w2, b2))
    ref = _reference(x, w1, b1, w2, b2)
    assert out.shape == (batch, action_dim)
    # bf16 MXU operands -> loosened value tolerance; exact division -> tight row sums.
    assert jnp.allclose(out, ref, atol=1e-2), "mismatch vs reference (small batch)"
    assert jnp.allclose(jnp.sum(out, axis=1), 1.0, atol=1e-3), "rows must sum to ~1"

    # Exercise the balanced multi-tile grid: B=600, block_b=256 -> 3 tiles of
    # 200 rows each, zero batch padding.
    big_b = 600
    xb = jax.random.normal(kx2, (big_b, state_dim), jnp.float32)
    out_b = jax.block_until_ready(policy_net_forward(xb, w1, b1, w2, b2, block_b=256))
    ref_b = _reference(xb, w1, b1, w2, b2)
    assert out_b.shape == (big_b, action_dim)
    assert jnp.allclose(out_b, ref_b, atol=1e-2), "mismatch vs reference (big batch)"

    print("KERNEL_OK")
</pallas_src>

<mosaic_0001>
module attributes {stable_mosaic.version = 11 : i64} {
  func.func @_policy_kernel(%arg0: i32, %arg1: memref<8x4xbf16, #tpu.memory_space<vmem>>, %arg2: memref<4x128xbf16, #tpu.memory_space<vmem>>, %arg3: memref<1x128xf32, #tpu.memory_space<vmem>>, %arg4: memref<128x128xbf16, #tpu.memory_space<vmem>>, %arg5: memref<1x128xf32, #tpu.memory_space<vmem>>, %arg6: memref<8x2xf32, #tpu.memory_space<vmem>>) attributes {dimension_semantics = [#tpu.dimension_semantics<parallel>], iteration_bounds = array<i64: 1>, scalar_prefetch = 0 : i64, scratch_operands = 0 : i64, tpu.core_type = #tpu.core_type<tc>, window_params = [{transform_indices = @transform_0, window_bounds = array<i64: 8, 4>}, {pipeline_mode = #tpu.pipeline_mode<synchronous>, transform_indices = @transform_1, window_bounds = array<i64: 4, 128>}, {pipeline_mode = #tpu.pipeline_mode<synchronous>, transform_indices = @transform_2, window_bounds = array<i64: 1, 128>}, {pipeline_mode = #tpu.pipeline_mode<synchronous>, transform_indices = @transform_3, window_bounds = array<i64: 128, 128>}, {pipeline_mode = #tpu.pipeline_mode<synchronous>, transform_indices = @transform_4, window_bounds = array<i64: 1, 128>}, {transform_indices = @transform_5, window_bounds = array<i64: 8, 2>}]} {
    %c0 = arith.constant 0 : index
    %c0_0 = arith.constant 0 : index
    %0 = vector.load %arg1[%c0, %c0_0] : memref<8x4xbf16, #tpu.memory_space<vmem>>, vector<8x4xbf16>
    %c0_1 = arith.constant 0 : index
    %c0_2 = arith.constant 0 : index
    %1 = vector.load %arg2[%c0_1, %c0_2] : memref<4x128xbf16, #tpu.memory_space<vmem>>, vector<4x128xbf16>
    %cst = arith.constant dense<0.000000e+00> : vector<8x128xf32>
    %2 = tpu.matmul %0, %1, %cst {dimension_numbers = #tpu.dot_dimension_numbers<[1], [0], [0], [1], [0, 0, 1, 1], [], []>} : vector<8x4xbf16>, vector<4x128xbf16>, vector<8x128xf32> -> vector<8x128xf32>
    %c0_3 = arith.constant 0 : index
    %c0_4 = arith.constant 0 : index
    %3 = vector.load %arg3[%c0_3, %c0_4] : memref<1x128xf32, #tpu.memory_space<vmem>>, vector<1x128xf32>
    %4 = vector.broadcast %3 : vector<1x128xf32> to vector<8x128xf32>
    %5 = arith.addf %2, %4 : vector<8x128xf32>
    %cst_5 = arith.constant 0.000000e+00 : f32
    %6 = vector.broadcast %cst_5 : f32 to vector<8x128xf32>
    %7 = arith.maximumf %5, %6 : vector<8x128xf32>
    %8 = arith.truncf %7 : vector<8x128xf32> to vector<8x128xbf16>
    %c0_6 = arith.constant 0 : index
    %c0_7 = arith.constant 0 : index
    %9 = vector.load %arg4[%c0_6, %c0_7] : memref<128x128xbf16, #tpu.memory_space<vmem>>, vector<128x128xbf16>
    %cst_8 = arith.constant dense<0.000000e+00> : vector<8x128xf32>
    %10 = tpu.matmul %8, %9, %cst_8 {dimension_numbers = #tpu.dot_dimension_numbers<[1], [0], [0], [1], [0, 0, 1, 1], [], []>} : vector<8x128xbf16>, vector<128x128xbf16>, vector<8x128xf32> -> vector<8x128xf32>
    %c0_9 = arith.constant 0 : index
    %c0_10 = arith.constant 0 : index
    %11 = vector.load %arg5[%c0_9, %c0_10] : memref<1x128xf32, #tpu.memory_space<vmem>>, vector<1x128xf32>
    %12 = vector.broadcast %11 : vector<1x128xf32> to vector<8x128xf32>
    %13 = arith.addf %10, %12 : vector<8x128xf32>
    %cst_11 = arith.constant dense<0xFF800000> : vector<8xf32>
    %14 = vector.multi_reduction <maximumf>, %13, %cst_11 [1] : vector<8x128xf32> to vector<8xf32>
    %15 = vector.shape_cast %14 : vector<8xf32> to vector<8x1xf32>
    %16 = vector.broadcast %15 : vector<8x1xf32> to vector<8x128xf32>
    %17 = arith.subf %13, %16 : vector<8x128xf32>
    %18 = math.exp %17 : vector<8x128xf32>
    %cst_12 = arith.constant dense<0.000000e+00> : vector<8xf32>
    %19 = vector.multi_reduction <add>, %18, %cst_12 [1] : vector<8x128xf32> to vector<8xf32>
    %20 = vector.shape_cast %19 : vector<8xf32> to vector<8x1xf32>
    %21 = vector.broadcast %20 : vector<8x1xf32> to vector<8x128xf32>
    %22 = arith.divf %18, %21 : vector<8x128xf32>
    %23 = vector.extract_strided_slice %22 {offsets = [0, 0], sizes = [8, 2], strides = [1, 1]} : vector<8x128xf32> to vector<8x2xf32>
    %c0_13 = arith.constant 0 : index
    %c0_14 = arith.constant 0 : index
    %24 = vector.load %arg6[%c0_13, %c0_14] : memref<8x2xf32, #tpu.memory_space<vmem>>, vector<8x2xf32>
    tpu.vector_store %arg6[%c0_13, %c0_14], %23 {strides = array<i32>} : memref<8x2xf32, #tpu.memory_space<vmem>>, vector<8x2xf32>,
    return
  }
  func.func @transform_0(%arg0: i32) -> (i32, i32) {
    %c0_i32 = arith.constant 0 : i32
    %c0_i32_0 = arith.constant 0 : i32
    return %arg0, %c0_i32 : i32, i32
  }
  func.func @transform_1(%arg0: i32) -> (i32, i32) {
    %c0_i32 = arith.constant 0 : i32
    %c0_i32_0 = arith.constant 0 : i32
    %c0_i32_1 = arith.constant 0 : i32
    return %c0_i32, %c0_i32_0 : i32, i32
  }
  func.func @transform_2(%arg0: i32) -> (i32, i32) {
    %c0_i32 = arith.constant 0 : i32
    %c0_i32_0 = arith.constant 0 : i32
    %c0_i32_1 = arith.constant 0 : i32
    return %c0_i32, %c0_i32_0 : i32, i32
  }
  func.func @transform_3(%arg0: i32) -> (i32, i32) {
    %c0_i32 = arith.constant 0 : i32
    %c0_i32_0 = arith.constant 0 : i32
    %c0_i32_1 = arith.constant 0 : i32
    return %c0_i32, %c0_i32_0 : i32, i32
  }
  func.func @transform_4(%arg0: i32) -> (i32, i32) {
    %c0_i32 = arith.constant 0 : i32
    %c0_i32_0 = arith.constant 0 : i32
    %c0_i32_1 = arith.constant 0 : i32
    return %c0_i32, %c0_i32_0 : i32, i32
  }
  func.func @transform_5(%arg0: i32) -> (i32, i32) {
    %c0_i32 = arith.constant 0 : i32
    %c0_i32_0 = arith.constant 0 : i32
    return %arg0, %c0_i32 : i32, i32
  }
}

</mosaic_0001>

<bundles_post_ra>
// kernel: policy_net_forward.1
= control target key start
LH: loop header
LB: loop body
LE: loop exit
PB: predicated region body
PF: predicated region fallthrough
CT: control target
= control target key end

     0   :  { %vm34_vm0 = vcmask 1041408   ;;  %v268_v0 = vmov 0.0   ;;  %vm269_vm1 = vmmov 0   ;;  %vm30_vm2 = vcmask 31744   ;;  %s339_s1 = inlined_call_operand.vmem [shape: bf16[4,128], index: 1, kind: input, shape index: {}]   ;;  %s340_s0 = inlined_call_operand.vmem [shape: bf16[8,4], index: 0, kind: input, shape index: {}]   ;;  %s341_s3 = inlined_call_operand.vmem [shape: bf16[128,128], index: 3, kind: input, shape index: {}]   ;;  %s342_s2 = inlined_call_operand.vmem [shape: f32[1,128], index: 2, kind: input, shape index: {}]   ;;  %s343_s4 = inlined_call_operand.vmem [shape: f32[1,128], index: 4, kind: input, shape index: {}]   ;;  %s344_s5 = inlined_call_operand.vmem [shape: f32[8,2], index: 5, kind: output, shape index: {}]  }
   0x1   :  { %228 = vmatprep.subr.bf16.mxu0 %v268_v0  ;;  %v22_v1 = vld [vmem:[%s339_s1] sm:$0x3]  ;;  %230 = vmatprep.mubr.msk.bf16.mxu0 %vm269_vm1, %v268_v0  ;;  %v257_v5 = vld [vmem:[%s341_s3 + $0x8] sm:$0xff]   ;;  %v258_v6 = vld [vmem:[%s341_s3 + $0x10] sm:$0xff]   ;;  %vm200_vm3 = vcmask 15360  }
   0x2   :  { %v36_v2 = vsel %vm34_vm0, %v22_v1, 0  ;;  %234 = vmatprep.subr.bf16.mxu1 %v268_v0  ;;  %v256_v3 = vld [vmem:[%s341_s3] sm:$0xff]   ;;  %250 = vmatprep.mubr.msk.bf16.mxu1 %vm269_vm1, %v268_v0  ;;  %v259_v7 = vld [vmem:[%s341_s3 + $0x18] sm:$0xff]   ;;  %v261_v9 = vld [vmem:[%s341_s3 + $0x28] sm:$0xff]  }
   0x3   :  { %229 = vmatpush3.bf16.msra.mxu0 %v36_v2  ;;  %v21_v4 = vld [vmem:[%s340_s0] sm:$0xf]  ;;  %235 = vmatpush3.bf16.msra.mxu1 %v256_v3  ;;  %v262_v10 = vld [vmem:[%s341_s3 + $0x30] sm:$0xff]   ;;  %v263_v11 = vld [vmem:[%s341_s3 + $0x38] sm:$0xff]  }
   0x4   :  { %236 = vmatprep.subr.bf16.mxu1 %v268_v0  ;;  %v260_v8 = vld [vmem:[%s341_s3 + $0x20] sm:$0xff]  }
   0x5   :  { %v206_v12 = vld [vmem:[%s342_s2] ss:$0 sm:$0xff] }
   0x6   :  { %231 = vmatmul.mubr.msk.bf16.vlgmr.msra.gmra.mrb[0].mxu0 %vm30_vm2, %v21_v4  ;;  %v208_v20 = vld [vmem:[%s343_s4] ss:$0 sm:$0xff] }
   0x7   :  { %237 = vmatpush3.bf16.msra.mxu1 %v257_v5 }
   0x8   :  { %238 = vmatprep.subr.bf16.mxu1 %v268_v0 }
   0xb   :  { %239 = vmatpush3.bf16.msra.mxu1 %v258_v6 }
   0xc   :  { %240 = vmatprep.subr.bf16.mxu1 %v268_v0 }
   0xf   :  { %241 = vmatpush3.bf16.msra.mxu1 %v259_v7 }
  0x10   :  { %242 = vmatprep.subr.bf16.mxu1 %v268_v0 }
  0x13   :  { %243 = vmatpush3.bf16.msra.mxu1 %v260_v8 }
  0x14   :  { %244 = vmatprep.subr.bf16.mxu1 %v268_v0 }
  0x17   :  { %245 = vmatpush3.bf16.msra.mxu1 %v261_v9 }
  0x18   :  { %246 = vmatprep.subr.bf16.mxu1 %v268_v0 }
  0x1b   :  { %247 = vmatpush3.bf16.msra.mxu1 %v262_v10 }
  0x1c   :  { %248 = vmatprep.subr.bf16.mxu1 %v268_v0 }
  0x1f   :  { %249 = vmatpush3.bf16.msra.mxu1 %v263_v11 }
  0xd9   :  { %v72_v13 = vpop.f32.mrb[0].mxu0 }
  0xda   :  { %v73_v14 = vadd.f32 %v206_v12, %v72_v13  ;;  %v232_v15 = vpop.f32.mrb[1].mxu0 }
  0xdb   :  { %v75_v16 = vpop.f32.mrb[2].mxu0 }
  0xdc   :  { %v78_v17 = vmax.f32 %v73_v14, 0.0  ;;  %v233_v18 = vpop.f32.mrb[3].mxu0 }
  0xde   :  { %v79_v19 = vpack.c.bf16 %v78_v17, %v78_v17 }
  0xe0   :  { %251 = vmatmul.mubr.bf16.vlgmr.msra.gmra.mrb[0].mxu1 %v79_v19 }
 0x1b3   :  { %v185_v21 = vpop.f32.mrb[0].mxu1 }
 0x1b4   :  { %v186_v22 = vadd.f32 %v208_v20, %v185_v21  ;;  %v252_v23 = vpop.f32.mrb[1].mxu1 }
 0x1b5   :  { %v188_v24 = vpop.f32.mrb[2].mxu1 }
 0x1b6   :  { %191 = vmax.xlane.f32.xlu0 %v186_v22  ;;  %v253_v25 = vpop.f32.mrb[3].mxu1 }
 0x243   :  { %v192_v26 = vpop.xlane.xlu0 %191 }
 0x244   :  { %v193_v27 = vsub.f32 %v186_v22, %v192_v26 }
 0x246   :  { %v194_v28 = vmul.f32 1.442695, %v193_v27 }
 0x248   :  { %264 = vpow2.f32 %v194_v28 }
 0x252   :  { %v265_v29 = vpop.eup %264 }
 0x253   :  { %196 = vadd.xlane.f32.xlu0 %v265_v29 }
 0x2e0   :  { %v197_v30 = vpop.xlane.xlu0 %196 }
 0x2e1   :  { %266 = vrcp.f32 %v197_v30 }
 0x2eb   :  { %v267_v31 = vpop.eup %266 }
 0x2ec   :  { %v199_v32 = vmul.f32 %v267_v31, %v265_v29 }
 0x2ee   :  { %201 = vst.msk [vmem:[%s344_s5] sm:$0xff] %vm200_vm3, %v199_v32 }

</bundles_post_ra>
